<compile_context>
chip_gen: v6e
topology: v6e:2x2x1
jax: 0.10.0
libtpu: 0.0.40
codegen_flags: <defaults>
</compile_context>

<pallas_src>
import jax
import jax.numpy as jnp
from jax import lax
from jax.experimental import pallas as pl
from jax.experimental.pallas import tpu as pltpu


def basic_block_kernel(x_ref, w0_ref, s0_ref, b0_ref,
                       w1_ref, s1_ref, b1_ref, out_ref):
    """Fused conv3x3 -> BN -> ReLU -> conv3x3 -> BN -> +residual -> ReLU.

    All operands are lane-dense:
      x_ref   : (1, H, W*Cin)      one image, channels flattened into lanes
      w*_ref  : (3*W*Cin, W*Cout)  block-banded conv weights (kw taps folded in)
      s*,b*   : (1, W*Cout)        folded BN scale / bias, tiled over W
      out_ref : (1, H, W*Cout)
    """
    x = x_ref[0].astype(jnp.float32)                         # (H, W*C)

    def conv3x3(inp, w_ref):
        h, wc = inp.shape
        zrow = jnp.zeros((1, wc), jnp.float32)
        up = jnp.concatenate([zrow, inp[:h - 1, :]], axis=0)  # row h-1 (kh=0)
        dn = jnp.concatenate([inp[1:, :], zrow], axis=0)      # row h+1 (kh=2)
        patch = jnp.concatenate([up, inp, dn], axis=1)        # (H, 3*W*C)
        return jnp.dot(patch, w_ref[...],
                       preferred_element_type=jnp.float32)

    y = conv3x3(x, w0_ref)
    y = jnp.maximum(y * s0_ref[...] + b0_ref[...], 0.0)       # bn0 + relu
    y = conv3x3(y, w1_ref)
    y = y * s1_ref[...] + b1_ref[...] + x                     # bn1 + identity residual
    out_ref[0] = jnp.maximum(y, 0.0).astype(out_ref.dtype)    # relu, full-lane store


def _banded_conv3x3_weight(w, width):
    """Torch (Cout, Cin, 3, 3) conv weight -> (3*W*Cin, W*Cout) block-banded.

    Row-block kh multiplies the input rows shifted by kh-1; within a block the
    kw = dw+1 tap sits on the dw-th block off-diagonal, which realizes the
    W-direction shift (and its zero padding) inside the matmul itself.
    """
    cout, cin = w.shape[0], w.shape[1]
    blocks = []
    for kh in range(3):
        blk = jnp.zeros((width * cin, width * cout), w.dtype)
        for kw in range(3):
            dw = kw - 1
            a = jnp.transpose(w[:, :, kh, kw])                # (Cin, Cout)
            band = jnp.eye(width, k=-dw, dtype=w.dtype)       # band[w1,w2]=1 iff w1-w2==dw
            blk = blk + jnp.kron(band, a)
        blocks.append(blk)
    return jnp.concatenate(blocks, axis=0)                    # (3*W*Cin, W*Cout)


@jax.jit
def basic_block_forward(x_nchw, w0, g0, be0, m0, v0, w1, g1, be1, m1, v1):
    """BasicBlock forward (stride=1, downsample=None), BatchNorm in eval mode."""
    eps = 1e-5
    s0 = g0 / jnp.sqrt(v0 + eps)
    b0 = be0 - m0 * s0
    s1 = g1 / jnp.sqrt(v1 + eps)
    b1 = be1 - m1 * s1

    N, Cin, H, W = x_nchw.shape
    Cout = w0.shape[0]

    # NCHW -> NHWC -> lane-dense (N, H, W*C).
    # TODO(synk): keep the surrounding graph in NHWC/lane-dense so these
    # transposes only happen at network boundaries, not once per block.
    x_ld = jnp.transpose(x_nchw, (0, 2, 3, 1)).reshape(N, H, W * Cin)

    w0b = _banded_conv3x3_weight(w0, W)                       # (3*W*Cin, W*Cout)
    w1b = _banded_conv3x3_weight(w1, W)                       # (3*W*Cout, W*Cout)

    s0_ld = jnp.tile(s0, W).reshape(1, W * Cout)
    b0_ld = jnp.tile(b0, W).reshape(1, W * Cout)
    s1_ld = jnp.tile(s1, W).reshape(1, W * Cout)
    b1_ld = jnp.tile(b1, W).reshape(1, W * Cout)

    vec_spec = pl.BlockSpec((1, W * Cout), lambda n: (0, 0))
    out_ld = pl.pallas_call(
        basic_block_kernel,
        out_shape=jax.ShapeDtypeStruct((N, H, W * Cout), x_nchw.dtype),
        grid=(N,),
        in_specs=[
            pl.BlockSpec((1, H, W * Cin), lambda n: (n, 0, 0)),
            pl.BlockSpec((3 * W * Cin, W * Cout), lambda n: (0, 0)),
            vec_spec, vec_spec,
            pl.BlockSpec((3 * W * Cout, W * Cout), lambda n: (0, 0)),
            vec_spec, vec_spec,
        ],
        out_specs=pl.BlockSpec((1, H, W * Cout), lambda n: (n, 0, 0)),
        compiler_params=pltpu.CompilerParams(
            dimension_semantics=("parallel",)),
    )(x_ld, w0b, s0_ld, b0_ld, w1b, s1_ld, b1_ld)

    # lane-dense -> NHWC -> NCHW
    return jnp.transpose(out_ld.reshape(N, H, W, Cout), (0, 3, 1, 2))


def _reference_forward(x_nchw, w0, g0, be0, m0, v0, w1, g1, be1, m1, v1):
    """Pure-JAX reference (lax.conv), inference-mode BN."""
    eps = 1e-5
    s0 = g0 / jnp.sqrt(v0 + eps)
    b0 = be0 - m0 * s0
    s1 = g1 / jnp.sqrt(v1 + eps)
    b1 = be1 - m1 * s1

    x = jnp.transpose(x_nchw, (0, 2, 3, 1))
    w0_hwio = jnp.transpose(w0, (2, 3, 1, 0))
    w1_hwio = jnp.transpose(w1, (2, 3, 1, 0))
    dn = ("NHWC", "HWIO", "NHWC")

    o = lax.conv_general_dilated(x, w0_hwio, (1, 1), "SAME",
                                 dimension_numbers=dn)
    o = jnp.maximum(o * s0 + b0, 0.0)
    o = lax.conv_general_dilated(o, w1_hwio, (1, 1), "SAME",
                                 dimension_numbers=dn)
    o = o * s1 + b1 + x
    o = jnp.maximum(o, 0.0)
    return jnp.transpose(o, (0, 3, 1, 2))


if __name__ == "__main__":
    # BasicBlock(inplanes=8, planes=8, stride=1, downsample=None)
    N, C, H, W = 2, 8, 16, 16      # W*C == 128 -> exactly one vreg row per image row
    key = jax.random.PRNGKey(0)
    keys = jax.random.split(key, 11)

    x = jax.random.normal(keys[0], (N, C, H, W), jnp.float32)

    w0 = jax.random.normal(keys[1], (C, C, 3, 3), jnp.float32) * 0.1
    w1 = jax.random.normal(keys[2], (C, C, 3, 3), jnp.float32) * 0.1

    g0 = 1.0 + 0.1 * jax.random.normal(keys[3], (C,), jnp.float32)
    be0 = 0.1 * jax.random.normal(keys[4], (C,), jnp.float32)
    m0 = 0.1 * jax.random.normal(keys[5], (C,), jnp.float32)
    v0 = 1.0 + 0.1 * jax.random.uniform(keys[6], (C,), jnp.float32)

    g1 = 1.0 + 0.1 * jax.random.normal(keys[7], (C,), jnp.float32)
    be1 = 0.1 * jax.random.normal(keys[8], (C,), jnp.float32)
    m1 = 0.1 * jax.random.normal(keys[9], (C,), jnp.float32)
    v1 = 1.0 + 0.1 * jax.random.uniform(keys[10], (C,), jnp.float32)

    out = basic_block_forward(x, w0, g0, be0, m0, v0, w1, g1, be1, m1, v1)
    out = jax.block_until_ready(out)

    ref = _reference_forward(x, w0, g0, be0, m0, v0, w1, g1, be1, m1, v1)
    ref = jax.block_until_ready(ref)

    assert out.shape == (N, C, H, W)
    assert jnp.allclose(out, ref, atol=1e-4, rtol=1e-4), (
        float(jnp.max(jnp.abs(out - ref))))

    print("KERNEL_OK")
</pallas_src>

<mosaic_0001>
module attributes {stable_mosaic.version = 11 : i64} {
  func.func @basic_block_kernel(%arg0: i32, %arg1: memref<1x16x128xf32, #tpu.memory_space<vmem>>, %arg2: memref<384x128xf32, #tpu.memory_space<vmem>>, %arg3: memref<1x128xf32, #tpu.memory_space<vmem>>, %arg4: memref<1x128xf32, #tpu.memory_space<vmem>>, %arg5: memref<384x128xf32, #tpu.memory_space<vmem>>, %arg6: memref<1x128xf32, #tpu.memory_space<vmem>>, %arg7: memref<1x128xf32, #tpu.memory_space<vmem>>, %arg8: memref<1x16x128xf32, #tpu.memory_space<vmem>>) attributes {dimension_semantics = [#tpu.dimension_semantics<parallel>], iteration_bounds = array<i64: 2>, scalar_prefetch = 0 : i64, scratch_operands = 0 : i64, tpu.core_type = #tpu.core_type<tc>, window_params = [{transform_indices = @transform_0, window_bounds = array<i64: 1, 16, 128>}, {pipeline_mode = #tpu.pipeline_mode<synchronous>, transform_indices = @transform_1, window_bounds = array<i64: 384, 128>}, {pipeline_mode = #tpu.pipeline_mode<synchronous>, transform_indices = @transform_2, window_bounds = array<i64: 1, 128>}, {pipeline_mode = #tpu.pipeline_mode<synchronous>, transform_indices = @transform_3, window_bounds = array<i64: 1, 128>}, {pipeline_mode = #tpu.pipeline_mode<synchronous>, transform_indices = @transform_4, window_bounds = array<i64: 384, 128>}, {pipeline_mode = #tpu.pipeline_mode<synchronous>, transform_indices = @transform_5, window_bounds = array<i64: 1, 128>}, {pipeline_mode = #tpu.pipeline_mode<synchronous>, transform_indices = @transform_6, window_bounds = array<i64: 1, 128>}, {transform_indices = @transform_7, window_bounds = array<i64: 1, 16, 128>}]} {
    %c0 = arith.constant 0 : index
    %c0_0 = arith.constant 0 : index
    %c0_1 = arith.constant 0 : index
    %0 = vector.load %arg1[%c0, %c0_0, %c0_1] : memref<1x16x128xf32, #tpu.memory_space<vmem>>, vector<1x16x128xf32>
    %1 = vector.shape_cast %0 : vector<1x16x128xf32> to vector<16x128xf32>
    %cst = arith.constant 0.000000e+00 : f32
    %2 = vector.broadcast %cst : f32 to vector<1x128xf32>
    %3 = vector.extract_strided_slice %1 {offsets = [0, 0], sizes = [15, 128], strides = [1, 1]} : vector<16x128xf32> to vector<15x128xf32>
    %4 = tpu.concatenate %2, %3 in 0 : vector<1x128xf32>, vector<15x128xf32> -> vector<16x128xf32>
    %5 = vector.extract_strided_slice %1 {offsets = [1, 0], sizes = [15, 128], strides = [1, 1]} : vector<16x128xf32> to vector<15x128xf32>
    %6 = tpu.concatenate %5, %2 in 0 : vector<15x128xf32>, vector<1x128xf32> -> vector<16x128xf32>
    %7 = tpu.concatenate %4, %1, %6 in 1 : vector<16x128xf32>, vector<16x128xf32>, vector<16x128xf32> -> vector<16x384xf32>
    %c0_2 = arith.constant 0 : index
    %c0_3 = arith.constant 0 : index
    %8 = vector.load %arg2[%c0_2, %c0_3] : memref<384x128xf32, #tpu.memory_space<vmem>>, vector<384x128xf32>
    %cst_4 = arith.constant dense<0.000000e+00> : vector<16x128xf32>
    %9 = tpu.matmul %7, %8, %cst_4 {dimension_numbers = #tpu.dot_dimension_numbers<[1], [0], [0], [1], [0, 0, 1, 1], [], []>} : vector<16x384xf32>, vector<384x128xf32>, vector<16x128xf32> -> vector<16x128xf32>
    %c0_5 = arith.constant 0 : index
    %c0_6 = arith.constant 0 : index
    %10 = vector.load %arg3[%c0_5, %c0_6] : memref<1x128xf32, #tpu.memory_space<vmem>>, vector<1x128xf32>
    %11 = vector.broadcast %10 : vector<1x128xf32> to vector<16x128xf32>
    %12 = arith.mulf %9, %11 : vector<16x128xf32>
    %c0_7 = arith.constant 0 : index
    %c0_8 = arith.constant 0 : index
    %13 = vector.load %arg4[%c0_7, %c0_8] : memref<1x128xf32, #tpu.memory_space<vmem>>, vector<1x128xf32>
    %14 = vector.broadcast %13 : vector<1x128xf32> to vector<16x128xf32>
    %15 = arith.addf %12, %14 : vector<16x128xf32>
    %cst_9 = arith.constant 0.000000e+00 : f32
    %16 = vector.broadcast %cst_9 : f32 to vector<16x128xf32>
    %17 = arith.maximumf %15, %16 : vector<16x128xf32>
    %cst_10 = arith.constant 0.000000e+00 : f32
    %18 = vector.broadcast %cst_10 : f32 to vector<1x128xf32>
    %19 = vector.extract_strided_slice %17 {offsets = [0, 0], sizes = [15, 128], strides = [1, 1]} : vector<16x128xf32> to vector<15x128xf32>
    %20 = tpu.concatenate %18, %19 in 0 : vector<1x128xf32>, vector<15x128xf32> -> vector<16x128xf32>
    %21 = vector.extract_strided_slice %17 {offsets = [1, 0], sizes = [15, 128], strides = [1, 1]} : vector<16x128xf32> to vector<15x128xf32>
    %22 = tpu.concatenate %21, %18 in 0 : vector<15x128xf32>, vector<1x128xf32> -> vector<16x128xf32>
    %23 = tpu.concatenate %20, %17, %22 in 1 : vector<16x128xf32>, vector<16x128xf32>, vector<16x128xf32> -> vector<16x384xf32>
    %c0_11 = arith.constant 0 : index
    %c0_12 = arith.constant 0 : index
    %24 = vector.load %arg5[%c0_11, %c0_12] : memref<384x128xf32, #tpu.memory_space<vmem>>, vector<384x128xf32>
    %cst_13 = arith.constant dense<0.000000e+00> : vector<16x128xf32>
    %25 = tpu.matmul %23, %24, %cst_13 {dimension_numbers = #tpu.dot_dimension_numbers<[1], [0], [0], [1], [0, 0, 1, 1], [], []>} : vector<16x384xf32>, vector<384x128xf32>, vector<16x128xf32> -> vector<16x128xf32>
    %c0_14 = arith.constant 0 : index
    %c0_15 = arith.constant 0 : index
    %26 = vector.load %arg6[%c0_14, %c0_15] : memref<1x128xf32, #tpu.memory_space<vmem>>, vector<1x128xf32>
    %27 = vector.broadcast %26 : vector<1x128xf32> to vector<16x128xf32>
    %28 = arith.mulf %25, %27 : vector<16x128xf32>
    %c0_16 = arith.constant 0 : index
    %c0_17 = arith.constant 0 : index
    %29 = vector.load %arg7[%c0_16, %c0_17] : memref<1x128xf32, #tpu.memory_space<vmem>>, vector<1x128xf32>
    %30 = vector.broadcast %29 : vector<1x128xf32> to vector<16x128xf32>
    %31 = arith.addf %28, %30 : vector<16x128xf32>
    %32 = arith.addf %31, %1 : vector<16x128xf32>
    %cst_18 = arith.constant 0.000000e+00 : f32
    %33 = vector.broadcast %cst_18 : f32 to vector<16x128xf32>
    %34 = arith.maximumf %32, %33 : vector<16x128xf32>
    %c0_19 = arith.constant 0 : index
    %c0_20 = arith.constant 0 : index
    %c0_21 = arith.constant 0 : index
    %35 = vector.load %arg8[%c0_19, %c0_20, %c0_21] : memref<1x16x128xf32, #tpu.memory_space<vmem>>, vector<1x16x128xf32>
    %36 = vector.shape_cast %35 : vector<1x16x128xf32> to vector<16x128xf32>
    %37 = vector.shape_cast %34 : vector<16x128xf32> to vector<1x16x128xf32>
    tpu.vector_store %arg8[%c0_19, %c0_20, %c0_21], %37 {strides = array<i32>} : memref<1x16x128xf32, #tpu.memory_space<vmem>>, vector<1x16x128xf32>,
    return
  }
  func.func @transform_0(%arg0: i32) -> (i32, i32, i32) {
    %c0_i32 = arith.constant 0 : i32
    %c0_i32_0 = arith.constant 0 : i32
    %c0_i32_1 = arith.constant 0 : i32
    return %arg0, %c0_i32, %c0_i32_0 : i32, i32, i32
  }
  func.func @transform_1(%arg0: i32) -> (i32, i32) {
    %c0_i32 = arith.constant 0 : i32
    %c0_i32_0 = arith.constant 0 : i32
    %c0_i32_1 = arith.constant 0 : i32
    return %c0_i32, %c0_i32_0 : i32, i32
  }
  func.func @transform_2(%arg0: i32) -> (i32, i32) {
    %c0_i32 = arith.constant 0 : i32
    %c0_i32_0 = arith.constant 0 : i32
    %c0_i32_1 = arith.constant 0 : i32
    return %c0_i32, %c0_i32_0 : i32, i32
  }
  func.func @transform_3(%arg0: i32) -> (i32, i32) {
    %c0_i32 = arith.constant 0 : i32
    %c0_i32_0 = arith.constant 0 : i32
    %c0_i32_1 = arith.constant 0 : i32
    return %c0_i32, %c0_i32_0 : i32, i32
  }
  func.func @transform_4(%arg0: i32) -> (i32, i32) {
    %c0_i32 = arith.constant 0 : i32
    %c0_i32_0 = arith.constant 0 : i32
    %c0_i32_1 = arith.constant 0 : i32
    return %c0_i32, %c0_i32_0 : i32, i32
  }
  func.func @transform_5(%arg0: i32) -> (i32, i32) {
    %c0_i32 = arith.constant 0 : i32
    %c0_i32_0 = arith.constant 0 : i32
    %c0_i32_1 = arith.constant 0 : i32
    return %c0_i32, %c0_i32_0 : i32, i32
  }
  func.func @transform_6(%arg0: i32) -> (i32, i32) {
    %c0_i32 = arith.constant 0 : i32
    %c0_i32_0 = arith.constant 0 : i32
    %c0_i32_1 = arith.constant 0 : i32
    return %c0_i32, %c0_i32_0 : i32, i32
  }
  func.func @transform_7(%arg0: i32) -> (i32, i32, i32) {
    %c0_i32 = arith.constant 0 : i32
    %c0_i32_0 = arith.constant 0 : i32
    %c0_i32_1 = arith.constant 0 : i32
    return %arg0, %c0_i32, %c0_i32_0 : i32, i32, i32
  }
}

</mosaic_0001>

<bundles_post_ra>
// kernel: tile.23
= control target key start
LH: loop header
LB: loop body
LE: loop exit
PB: predicated region body
PF: predicated region fallthrough
CT: control target
= control target key end

     0   :  { %s28_s0 = inlined_call_operand.vmem [shape: f32[8], index: 0, kind: input, shape index: {}]   ;;  %s29_s1 = inlined_call_operand.vmem [shape: f32[16,8], index: 1, kind: output, shape index: {}]  }
   0x1   :  { %v4_v0 = vld [vmem:[%s28_s0] ss:$0 sm:$0xff] }
   0x2   :  { %5 = vst [vmem:[%s29_s1] sm:$0xff] %v4_v0  ;;  %8 = vst [vmem:[%s29_s1 + $0x8] sm:$0xff] %v4_v0 }

// kernel: tile.24
= control target key start
LH: loop header
LB: loop body
LE: loop exit
PB: predicated region body
PF: predicated region fallthrough
CT: control target
= control target key end

     0   :  { %s133_s10 = smov 120   ;;  %s134_s11 = smov 104   ;;  %vm3_vm0 = vcmask 64512   ;;  %vm9_vm1 = vcmask 1048512   ;;  %vm15_vm2 = vcmask 982912   ;;  %vm21_vm3 = vcmask 917312   ;;  %s209_s0 = inlined_call_operand.vmem [shape: f32[16,8], index: 0, kind: input, shape index: {}]   ;;  %s210_s1 = inlined_call_operand.vmem [shape: f32[1,128], index: 1, kind: output, shape index: {}]  }
   0x1   :  { %v103_v0 = vld [vmem:[%s209_s0 + $0xf] sm:$0x1]   ;;  %v105_v1 = vld [vmem:[%s209_s0 + $0xd] sm:$0x1]   ;;  %v104_v2 = vld [vmem:[%s209_s0 + $0xe] sm:$0x1]  }
   0x2   :  { %7 = vrot.lane.b32.xlu0 %v103_v0, %s133_s10  ;;  %19 = vrot.lane.b32.xlu1 %v105_v1, %s134_s11  ;;  %v106_v3 = vld [vmem:[%s209_s0 + $0xc] sm:$0x1]   ;;  %s135_s16 = smov 112   ;;  %s136_s17 = smov 96   ;;  %v107_v4 = vld [vmem:[%s209_s0 + $0xb] sm:$0x1]  }
   0x3   :  { %v108_v5 = vld [vmem:[%s209_s0 + $0xa] sm:$0x1]   ;;  %v2_v6 = vld [vmem:[%s209_s0] sm:$0x1]   ;;  %s137_s24 = smov 88   ;;  %s138_s25 = smov 80  }
   0x4   :  { %4 = vst.msk [vmem:[#allocation0] sm:$0x1] %vm3_vm0, %v2_v6   ;;  %v109_v7 = vld [vmem:[%s209_s0 + $0x9] sm:$0x1]   ;;  %v110_v8 = vld [vmem:[%s209_s0 + $0x8] sm:$0x1]  }
   0x5   :  { %s139_s30 = smov 72   ;;  %s140_s2 = smov 64   ;;  %v111_v9 = vld [vmem:[%s209_s0 + $0x7] sm:$0x1]   ;;  %v112_v10 = vld [vmem:[%s209_s0 + $0x6] sm:$0x1]  }
   0x6   :  { %13 = vrot.lane.b32.xlu0 %v104_v2, %s135_s16  ;;  %25 = vrot.lane.b32.xlu1 %v106_v3, %s136_s17  ;;  %s141_s7 = smov 56   ;;  %s142_s8 = smov 48   ;;  %v113_v11 = vld [vmem:[%s209_s0 + $0x5] sm:$0x1]   ;;  %v114_v12 = vld [vmem:[%s209_s0 + $0x4] sm:$0x1]  }
   0x7   :  { %s143_s13 = smov 40   ;;  %s144_s14 = smov 32   ;;  %v115_v13 = vld [vmem:[%s209_s0 + $0x3] sm:$0x1]   ;;  %v116_v14 = vld [vmem:[%s209_s0 + $0x2] sm:$0x1]  }
   0x8   :  { %s145_s19 = smov 24   ;;  %s146_s20 = smov 16   ;;  %v117_v15 = vld [vmem:[%s209_s0 + $0x1] sm:$0x1]   ;;  %vm27_vm4 = vcmask 851712   ;;  %vm33_vm5 = vcmask 786112  }
   0x9   :  { %s147_s0 = smov 8   ;;  %vm39_vm6 = vcmask 720512   ;;  %vm45_vm7 = vcmask 654912   ;;  %vm51_vm8 = vcmask 589312   ;;  %vm57_vm9 = vcmask 523712  }
   0xa   :  { %31 = vrot.lane.b32.xlu0 %v107_v4, %s137_s24  ;;  %37 = vrot.lane.b32.xlu1 %v108_v5, %s138_s25  ;;  %vm63_vm10 = vcmask 458112   ;;  %vm69_vm11 = vcmask 392512   ;;  %vm75_vm12 = vcmask 326912   ;;  %vm81_vm13 = vcmask 261312  }
   0xb   :  { %vm87_vm14 = vcmask 195712   ;;  %vm93_vm15 = vcmask 130112  }
   0xe   :  { %43 = vrot.lane.b32.xlu0 %v109_v7, %s139_s30  ;;  %49 = vrot.lane.b32.xlu1 %v110_v8, %s140_s2 }
  0x12   :  { %55 = vrot.lane.b32.xlu0 %v111_v9, %s141_s7  ;;  %61 = vrot.lane.b32.xlu1 %v112_v10, %s142_s8 }
  0x16   :  { %67 = vrot.lane.b32.xlu0 %v113_v11, %s143_s13  ;;  %73 = vrot.lane.b32.xlu1 %v114_v12, %s144_s14 }
  0x1a   :  { %79 = vrot.lane.b32.xlu0 %v115_v13, %s145_s19  ;;  %85 = vrot.lane.b32.xlu1 %v116_v14, %s146_s20 }
  0x1e   :  { %91 = vrot.lane.b32.xlu0 %v117_v15, %s147_s0 }
  0x74   :  { %v8_v16 = vpop.permute.xlu0 %7   ;;  %v20_v17 = vpop.permute.xlu1 %19  }
  0x75   :  { %10 = vst.msk [vmem:[#allocation0] sm:$0x1] %vm9_vm1, %v8_v16  }
  0x78   :  { %v14_v18 = vpop.permute.xlu0 %13   ;;  %v26_v19 = vpop.permute.xlu1 %25  }
  0x79   :  { %16 = vst.msk [vmem:[#allocation0] sm:$0x1] %vm15_vm2, %v14_v18  }
  0x7a   :  { %22 = vst.msk [vmem:[#allocation0] sm:$0x1] %vm21_vm3, %v20_v17  }
  0x7b   :  { %28 = vst.msk [vmem:[#allocation0] sm:$0x1] %vm27_vm4, %v26_v19  }
  0x7c   :  { %v32_v20 = vpop.permute.xlu0 %31   ;;  %v38_v21 = vpop.permute.xlu1 %37  }
  0x7d   :  { %34 = vst.msk [vmem:[#allocation0] sm:$0x1] %vm33_vm5, %v32_v20  }
  0x7e   :  { %40 = vst.msk [vmem:[#allocation0] sm:$0x1] %vm39_vm6, %v38_v21  }
  0x80   :  { %v44_v22 = vpop.permute.xlu0 %43   ;;  %v50_v23 = vpop.permute.xlu1 %49  }
  0x81   :  { %46 = vst.msk [vmem:[#allocation0] sm:$0x1] %vm45_vm7, %v44_v22  }
  0x82   :  { %52 = vst.msk [vmem:[#allocation0] sm:$0x1] %vm51_vm8, %v50_v23  }
  0x84   :  { %v56_v24 = vpop.permute.xlu0 %55   ;;  %v62_v25 = vpop.permute.xlu1 %61  }
  0x85   :  { %58 = vst.msk [vmem:[#allocation0] sm:$0x1] %vm57_vm9, %v56_v24  }
  0x86   :  { %64 = vst.msk [vmem:[#allocation0] sm:$0x1] %vm63_vm10, %v62_v25  }
  0x88   :  { %v68_v26 = vpop.permute.xlu0 %67   ;;  %v74_v27 = vpop.permute.xlu1 %73  }
  0x89   :  { %70 = vst.msk [vmem:[#allocation0] sm:$0x1] %vm69_vm11, %v68_v26  }
  0x8a   :  { %76 = vst.msk [vmem:[#allocation0] sm:$0x1] %vm75_vm12, %v74_v27  }
  0x8c   :  { %v80_v28 = vpop.permute.xlu0 %79   ;;  %v86_v29 = vpop.permute.xlu1 %85  }
  0x8d   :  { %82 = vst.msk [vmem:[#allocation0] sm:$0x1] %vm81_vm13, %v80_v28  }
  0x8e   :  { %88 = vst.msk [vmem:[#allocation0] sm:$0x1] %vm87_vm14, %v86_v29  }
  0x90   :  { %v92_v30 = vpop.permute.xlu0 %91  }
  0x91   :  { %94 = vst.msk [vmem:[#allocation0] sm:$0x1] %vm93_vm15, %v92_v30  }
  0x98   :  { %v99_v31 = vld [vmem:[#allocation0] sm:$0x1] }
  0x99   :  { %102 = vst [vmem:[%s210_s1] sm:$0x1] %v99_v31 }

// kernel: basic_block_forward.1
= control target key start
LH: loop header
LB: loop body
LE: loop exit
PB: predicated region body
PF: predicated region fallthrough
CT: control target
= control target key end

     0   :  { %s1067_s24 = smov 0   ;;  %s1428_s0 = inlined_call_operand.vmem [shape: f32[2,16,128], index: 0, kind: input, shape index: {}]   ;;  %s1429_s1 = inlined_call_operand.vmem [shape: f32[384,128], index: 1, kind: input, shape index: {}]   ;;  %s1430_s2 = inlined_call_operand.vmem [shape: f32[1,128], index: 2, kind: input, shape index: {}]   ;;  %s1431_s3 = inlined_call_operand.vmem [shape: f32[1,128], index: 3, kind: input, shape index: {}]   ;;  %s1432_s4 = inlined_call_operand.vmem [shape: f32[384,128], index: 4, kind: input, shape index: {}]   ;;  %s1433_s5 = inlined_call_operand.vmem [shape: f32[1,128], index: 5, kind: input, shape index: {}]   ;;  %s1434_s6 = inlined_call_operand.vmem [shape: f32[1,128], index: 6, kind: input, shape index: {}]   ;;  %s1435_s7 = inlined_call_operand.vmem [shape: f32[2,16,128], index: 7, kind: output, shape index: {}]  }
   0x1 LB: > { %s806_s25 = sadd.s32 4294967295, %s1025_s24   ;;  %p810_p0 = scmp.ge.s32.totalorder %s1025_s24, 1  ;;  %s1025_s24 = sphi %s1067_s24, %s17_s24  }
   0x2   : > { %p237_p1 = scmp.lt.s32.totalorder %s1025_s24, 3 }
   0x4   : > { %p238_p2 = pnand %p810_p0, %p237_p1 }
   0x5   : > { %p1137_p3 = scmp.lt.s32.totalorder (!%p238_p2), %s806_s25, 1 }
   0x6   : > { %241 = sbr.rel (%p238_p2) target bundleno = 465 (0x1d1), region = 48 }
   0xb   : > { %v328_v0 = vld [vmem:[%s1429_s1 + $0xf8] sm:$0xff]  ;;  %v327_v3 = vld [vmem:[%s1429_s1 + $0xf0] sm:$0xff]  ;;  %v326_v6 = vld [vmem:[%s1429_s1 + $0xe8] sm:$0xff]  ;;  %s1440_s25 = smov (!%p1137_p3, %s806_s25), 1  ;;  %vm283_vm0 = vcmask 1040384   ;;  %vm290_vm1 = vcmask 1046528  }
   0xc   : > { %v312_v1 = vld [vmem:[%s1429_s1 + $0x78] sm:$0xff]  ;;  %829 = vmatprep.subr.mxu0 %v328_v0  ;;  %v311_v4 = vld [vmem:[%s1429_s1 + $0x70] sm:$0xff]  ;;  %v342_v7 = vld [vmem:[%s1429_s1 + $0x168] sm:$0xff]  ;;  %s827_s28 = sshll.u32 %s1440_s25, 4 }
   0xd   : > { %v344_v2 = vld [vmem:[%s1429_s1 + $0x178] sm:$0xff]  ;;  %v343_v5 = vld [vmem:[%s1429_s1 + $0x170] sm:$0xff]  ;;  %830 = vmatpush3.msra.mxu0 %v312_v1  ;;  %v310_v8 = vld [vmem:[%s1429_s1 + $0x68] sm:$0xff]  ;;  %s273_s16 = scalar_lea.vmem %s1428_s0, %s827_s28  ;;  %s278_s30 = scalar_lea.vmem %s1435_s7, %s827_s28 }
   0xe   : > { %941 = vmatprep.subr.mxu1 %v344_v2  ;;  %831 = vmatprep.subr.mxu0 %v327_v3  ;;  %v325_v9 = vld [vmem:[%s1429_s1 + $0xe0] sm:$0xff]  ;;  %v324_v12 = vld [vmem:[%s1429_s1 + $0xd8] sm:$0xff]  ;;  %v323_v15 = vld [vmem:[%s1429_s1 + $0xd0] sm:$0xff] }
   0xf   : > { %942 = vmatpush3.msra.mxu1 %v344_v2  ;;  %832 = vmatpush3.msra.mxu0 %v311_v4  ;;  %v341_v10 = vld [vmem:[%s1429_s1 + $0x160] sm:$0xff]  ;;  %v340_v13 = vld [vmem:[%s1429_s1 + $0x158] sm:$0xff]  ;;  %v339_v16 = vld [vmem:[%s1429_s1 + $0x150] sm:$0xff] }
  0x10   : > { %943 = vmatprep.subr.mxu1 %v343_v5  ;;  %833 = vmatprep.subr.mxu0 %v326_v6  ;;  %v309_v11 = vld [vmem:[%s1429_s1 + $0x60] sm:$0xff]  ;;  %v308_v14 = vld [vmem:[%s1429_s1 + $0x58] sm:$0xff]  ;;  %v307_v17 = vld [vmem:[%s1429_s1 + $0x50] sm:$0xff] }
  0x11   : > { %944 = vmatpush3.msra.mxu1 %v343_v5  ;;  %834 = vmatpush3.msra.mxu0 %v310_v8  ;;  %v322_v18 = vld [vmem:[%s1429_s1 + $0xc8] sm:$0xff]  ;;  %v321_v21 = vld [vmem:[%s1429_s1 + $0xc0] sm:$0xff]  ;;  %v320_v24 = vld [vmem:[%s1429_s1 + $0xb8] sm:$0xff] }
  0x12   : > { %945 = vmatprep.subr.mxu1 %v342_v7  ;;  %835 = vmatprep.subr.mxu0 %v325_v9  ;;  %v338_v19 = vld [vmem:[%s1429_s1 + $0x148] sm:$0xff]  ;;  %v337_v22 = vld [vmem:[%s1429_s1 + $0x140] sm:$0xff]  ;;  %v336_v25 = vld [vmem:[%s1429_s1 + $0x138] sm:$0xff] }
  0x13   : > { %946 = vmatpush3.msra.mxu1 %v342_v7  ;;  %836 = vmatpush3.msra.mxu0 %v309_v11  ;;  %v306_v20 = vld [vmem:[%s1429_s1 + $0x48] sm:$0xff]  ;;  %v305_v23 = vld [vmem:[%s1429_s1 + $0x40] sm:$0xff]  ;;  %v304_v26 = vld [vmem:[%s1429_s1 + $0x38] sm:$0xff] }
  0x14   : > { %947 = vmatprep.subr.mxu1 %v341_v10  ;;  %837 = vmatprep.subr.mxu0 %v324_v12  ;;  %v319_v27 = vld [vmem:[%s1429_s1 + $0xb0] sm:$0xff]  ;;  %v318_v30 = vld [vmem:[%s1429_s1 + $0xa8] sm:$0xff]  ;;  %v317_v33 = vld [vmem:[%s1429_s1 + $0xa0] sm:$0xff] }
  0x15   : > { %948 = vmatpush3.msra.mxu1 %v341_v10  ;;  %838 = vmatpush3.msra.mxu0 %v308_v14  ;;  %v335_v28 = vld [vmem:[%s1429_s1 + $0x130] sm:$0xff]  ;;  %v334_v31 = vld [vmem:[%s1429_s1 + $0x128] sm:$0xff]  ;;  %v333_v34 = vld [vmem:[%s1429_s1 + $0x120] sm:$0xff] }
  0x16   : > { %949 = vmatprep.subr.mxu1 %v340_v13  ;;  %839 = vmatprep.subr.mxu0 %v323_v15  ;;  %v303_v29 = vld [vmem:[%s1429_s1 + $0x30] sm:$0xff]  ;;  %v302_v32 = vld [vmem:[%s1429_s1 + $0x28] sm:$0xff]  ;;  %v301_v35 = vld [vmem:[%s1429_s1 + $0x20] sm:$0xff] }
  0x17   : > { %950 = vmatpush3.msra.mxu1 %v340_v13  ;;  %840 = vmatpush3.msra.mxu0 %v307_v17  ;;  %v316_v36 = vld [vmem:[%s1429_s1 + $0x98] sm:$0xff]  ;;  %v315_v39 = vld [vmem:[%s1429_s1 + $0x90] sm:$0xff]  ;;  %v1216_v41 = vld [vmem:[%s273_s16] sm:$0xff] }
  0x18   : > { %951 = vmatprep.subr.mxu1 %v339_v16  ;;  %841 = vmatprep.subr.mxu0 %v322_v18  ;;  %v332_v37 = vld [vmem:[%s1429_s1 + $0x118] sm:$0xff]  ;;  %v331_v40 = vld [vmem:[%s1429_s1 + $0x110] sm:$0xff]  ;;  %v1218_v42 = vld [vmem:[%s273_s16 + $0x8] sm:$0xff]  ;;  %v291_v47 = vrot.slane %v1216_v41, 1  ;;  %v284_v52 = vrot.slane %v1216_v41, 7 }
  0x19   : > { %952 = vmatpush3.msra.mxu1 %v339_v16  ;;  %842 = vmatpush3.msra.mxu0 %v306_v20  ;;  %v300_v38 = vld [vmem:[%s1429_s1 + $0x18] sm:$0xff]  ;;  %v299_v43 = vld [vmem:[%s1429_s1 + $0x10] sm:$0xff]  ;;  %v314_v44 = vld [vmem:[%s1429_s1 + $0x88] sm:$0xff]  ;;  %v292_v48 = vrot.slane %v1218_v42, 1  ;;  %v285_v54 = vrot.slane %v1218_v42, 7 }
  0x1a   : > { %953 = vmatprep.subr.mxu1 %v338_v19  ;;  %843 = vmatprep.subr.mxu0 %v321_v21  ;;  %v330_v45 = vld [vmem:[%s1429_s1 + $0x108] sm:$0xff]  ;;  %v313_v49 = vld [vmem:[%s1429_s1 + $0x80] sm:$0xff]  ;;  %vm1245_vm2 = vmneg %vm283_vm0 }
  0x1b   : > { %954 = vmatpush3.msra.mxu1 %v338_v19  ;;  %844 = vmatpush3.msra.mxu0 %v305_v23  ;;  %v298_v46 = vld [vmem:[%s1429_s1 + $0x8] sm:$0xff]  ;;  %v297_v50 = vld [vmem:[%s1429_s1] sm:$0xff]  ;;  %v293_v55 = vsel %vm290_vm1, %v291_v47, %v292_v48  ;;  %v560_v56 = vld [vmem:[%s1432_s4 + $0xf8] sm:$0xff]  ;;  %v286_v59 = vsel %vm283_vm0, %v284_v52, %v285_v54 }
  0x1c   : > { %955 = vmatprep.subr.mxu1 %v337_v22  ;;  %845 = vmatprep.subr.mxu0 %v320_v24  ;;  %v329_v51 = vld [vmem:[%s1429_s1 + $0x100] sm:$0xff]  ;;  %v544_v57 = vld [vmem:[%s1432_s4 + $0x78] sm:$0xff]  ;;  %v559_v60 = vld [vmem:[%s1432_s4 + $0xf0] sm:$0xff] }
  0x1d   : > { %956 = vmatpush3.msra.mxu1 %v337_v22  ;;  %846 = vmatpush3.msra.mxu0 %v304_v26  ;;  %v576_v58 = vld [vmem:[%s1432_s4 + $0x178] sm:$0xff]  ;;  %v543_v61 = vld [vmem:[%s1432_s4 + $0x70] sm:$0xff]  ;;  %v558_v62 = vld [vmem:[%s1432_s4 + $0xe8] sm:$0xff] }
  0x1e   : > { %957 = vmatprep.subr.mxu1 %v336_v25  ;;  %847 = vmatprep.subr.mxu0 %v319_v27  ;;  %v575_v63 = vld [vmem:[%s1432_s4 + $0x170] sm:$0xff]  ;;  %v542_v0 = vld [vmem:[%s1432_s4 + $0x68] sm:$0xff]  ;;  %v557_v1 = vld [vmem:[%s1432_s4 + $0xe0] sm:$0xff] }
  0x1f   : > { %958 = vmatpush3.msra.mxu1 %v336_v25  ;;  %848 = vmatpush3.msra.mxu0 %v303_v29  ;;  %v574_v2 = vld [vmem:[%s1432_s4 + $0x168] sm:$0xff]  ;;  %v541_v3 = vld [vmem:[%s1432_s4 + $0x60] sm:$0xff]  ;;  %v556_v4 = vld [vmem:[%s1432_s4 + $0xd8] sm:$0xff] }
  0x20   : > { %959 = vmatprep.subr.mxu1 %v335_v28  ;;  %849 = vmatprep.subr.mxu0 %v318_v30  ;;  %v573_v5 = vld [vmem:[%s1432_s4 + $0x160] sm:$0xff]  ;;  %v540_v6 = vld [vmem:[%s1432_s4 + $0x58] sm:$0xff]  ;;  %v555_v7 = vld [vmem:[%s1432_s4 + $0xd0] sm:$0xff] }
  0x21   : > { %960 = vmatpush3.msra.mxu1 %v335_v28  ;;  %850 = vmatpush3.msra.mxu0 %v302_v32  ;;  %v572_v8 = vld [vmem:[%s1432_s4 + $0x158] sm:$0xff]  ;;  %v539_v9 = vld [vmem:[%s1432_s4 + $0x50] sm:$0xff]  ;;  %v554_v10 = vld [vmem:[%s1432_s4 + $0xc8] sm:$0xff] }
  0x22   : > { %961 = vmatprep.subr.mxu1 %v334_v31  ;;  %851 = vmatprep.subr.mxu0 %v317_v33  ;;  %v571_v11 = vld [vmem:[%s1432_s4 + $0x150] sm:$0xff]  ;;  %v538_v12 = vld [vmem:[%s1432_s4 + $0x48] sm:$0xff]  ;;  %v553_v13 = vld [vmem:[%s1432_s4 + $0xc0] sm:$0xff] }
  0x23   : > { %962 = vmatpush3.msra.mxu1 %v334_v31  ;;  %852 = vmatpush3.msra.mxu0 %v301_v35  ;;  %v537_v14 = vld [vmem:[%s1432_s4 + $0x40] sm:$0xff]  ;;  %v552_v15 = vld [vmem:[%s1432_s4 + $0xb8] sm:$0xff]  ;;  %v551_v17 = vld [vmem:[%s1432_s4 + $0xb0] sm:$0xff] }
  0x24   : > { %963 = vmatprep.subr.mxu1 %v333_v34  ;;  %853 = vmatprep.subr.mxu0 %v316_v36  ;;  %v536_v16 = vld [vmem:[%s1432_s4 + $0x38] sm:$0xff]  ;;  %v570_v18 = vld [vmem:[%s1432_s4 + $0x148] sm:$0xff]  ;;  %v535_v19 = vld [vmem:[%s1432_s4 + $0x30] sm:$0xff] }
  0x25   : > { %964 = vmatpush3.msra.mxu1 %v333_v34  ;;  %854 = vmatpush3.msra.mxu0 %v300_v38  ;;  %v550_v20 = vld [vmem:[%s1432_s4 + $0xa8] sm:$0xff]  ;;  %v569_v21 = vld [vmem:[%s1432_s4 + $0x140] sm:$0xff]  ;;  %v568_v24 = vld [vmem:[%s1432_s4 + $0x138] sm:$0xff] }
  0x26   : > { %965 = vmatprep.subr.mxu1 %v332_v37  ;;  %855 = vmatprep.subr.mxu0 %v315_v39  ;;  %v534_v22 = vld [vmem:[%s1432_s4 + $0x28] sm:$0xff]  ;;  %v549_v23 = vld [vmem:[%s1432_s4 + $0xa0] sm:$0xff]  ;;  %v548_v26 = vld [vmem:[%s1432_s4 + $0x98] sm:$0xff] }
  0x27   : > { %966 = vmatpush3.msra.mxu1 %v332_v37  ;;  %856 = vmatpush3.msra.mxu0 %v299_v43  ;;  %v533_v25 = vld [vmem:[%s1432_s4 + $0x20] sm:$0xff]  ;;  %v567_v27 = vld [vmem:[%s1432_s4 + $0x130] sm:$0xff]  ;;  %v532_v28 = vld [vmem:[%s1432_s4 + $0x18] sm:$0xff] }
  0x28   : > { %967 = vmatprep.subr.mxu1 %v331_v40  ;;  %857 = vmatprep.subr.mxu0 %v314_v44  ;;  %v547_v29 = vld [vmem:[%s1432_s4 + $0x90] sm:$0xff]  ;;  %v566_v30 = vld [vmem:[%s1432_s4 + $0x128] sm:$0xff]  ;;  %v565_v33 = vld [vmem:[%s1432_s4 + $0x120] sm:$0xff] }
  0x29   : > { %968 = vmatpush3.msra.mxu1 %v331_v40  ;;  %858 = vmatpush3.msra.mxu0 %v298_v46  ;;  %v531_v31 = vld [vmem:[%s1432_s4 + $0x10] sm:$0xff]  ;;  %v546_v32 = vld [vmem:[%s1432_s4 + $0x88] sm:$0xff]  ;;  %v545_v35 = vld [vmem:[%s1432_s4 + $0x80] sm:$0xff] }
  0x2a   : > { %969 = vmatprep.subr.mxu1 %v330_v45  ;;  %859 = vmatprep.subr.mxu0 %v313_v49  ;;  %v530_v34 = vld [vmem:[%s1432_s4 + $0x8] sm:$0xff]  ;;  %v564_v36 = vld [vmem:[%s1432_s4 + $0x118] sm:$0xff]  ;;  %v529_v37 = vld [vmem:[%s1432_s4] sm:$0xff] }
  0x2b   : > { %970 = vmatpush3.msra.mxu1 %v330_v45  ;;  %409 = vmatprep.mubr.f32.mxu0 %v1216_v41  ;;  %v563_v38 = vld [vmem:[%s1432_s4 + $0x110] sm:$0xff]  ;;  %v562_v39 = vld [vmem:[%s1432_s4 + $0x108] sm:$0xff]  ;;  %v561_v40 = vld [vmem:[%s1432_s4 + $0x100] sm:$0xff] }
  0x2c   : > { %860 = vmatpush3.msra.mxu0 %v297_v50  ;;  %971 = vmatprep.subr.mxu1 %v329_v51 }
  0x2d   : > { %816 = vmatmul.mubr.msk.f32.vlgmr.msra.gmra.mxu0 %vm1245_vm2, %v284_v52  ;;  %972 = vmatpush3.msra.mxu1 %v329_v51  ;;  %v819_v52 = vld [vmem:[%s1431_s3] ss:$0 sm:$0xff] }
  0x2e   : > { %973 = vmatprep.mubr.f32.mxu1 %v293_v55  ;;  %414 = vmatprep.mubr.f32.mxu0 %v1218_v42 }
  0x2f   : > { %974 = vmatmul.mubr.msk.f32.vlgmr.msra.gmra.mxu1 %vm290_vm1, %v292_v48  ;;  %885 = vmatprep.subr.mxu0 %v560_v56  ;;  %v818_v48 = vld [vmem:[%s1430_s2] ss:$0 sm:$0xff] }
  0x30   : > { %886 = vmatpush3.msra.mxu0 %v544_v57  ;;  %976 = vmatprep.subr.mxu1 %v576_v58 }
  0x31   : > { %415 = vmatmul.mubr.f32.gmra.mxu0 %v286_v59  ;;  %887 = vmatprep.subr.mxu0 %v559_v60 }
  0x32   : > { %888 = vmatpush3.msra.mxu0 %v543_v61  ;;  %977 = vmatpush3.msra.mxu1 %v576_v58 }
  0x33   : > { %889 = vmatprep.subr.mxu0 %v558_v62  ;;  %978 = vmatprep.subr.mxu1 %v575_v63 }
  0x34   : > { %890 = vmatpush3.msra.mxu0 %v542_v0  ;;  %979 = vmatpush3.msra.mxu1 %v575_v63 }
  0x35   : > { %891 = vmatprep.subr.mxu0 %v557_v1  ;;  %980 = vmatprep.subr.mxu1 %v574_v2 }
  0x36   : > { %892 = vmatpush3.msra.mxu0 %v541_v3  ;;  %981 = vmatpush3.msra.mxu1 %v574_v2 }
  0x37   : > { %893 = vmatprep.subr.mxu0 %v556_v4  ;;  %982 = vmatprep.subr.mxu1 %v573_v5 }
  0x38   : > { %894 = vmatpush3.msra.mxu0 %v540_v6  ;;  %983 = vmatpush3.msra.mxu1 %v573_v5 }
  0x39   : > { %895 = vmatprep.subr.mxu0 %v555_v7  ;;  %984 = vmatprep.subr.mxu1 %v572_v8 }
  0x3a   : > { %896 = vmatpush3.msra.mxu0 %v539_v9  ;;  %985 = vmatpush3.msra.mxu1 %v572_v8 }
  0x3b   : > { %897 = vmatprep.subr.mxu0 %v554_v10  ;;  %986 = vmatprep.subr.mxu1 %v571_v11 }
  0x3c   : > { %898 = vmatpush3.msra.mxu0 %v538_v12  ;;  %987 = vmatpush3.msra.mxu1 %v571_v11  ;;  %v823_v11 = vld [vmem:[%s1433_s5] ss:$0 sm:$0xff] }
  0x3d   : > { %899 = vmatprep.subr.mxu0 %v553_v13  ;;  %988 = vmatprep.subr.mxu1 %v570_v18 }
  0x3e   : > { %900 = vmatpush3.msra.mxu0 %v537_v14  ;;  %989 = vmatpush3.msra.mxu1 %v570_v18  ;;  %v824_v14 = vld [vmem:[%s1434_s6] ss:$0 sm:$0xff] }
  0x3f   : > { %901 = vmatprep.subr.mxu0 %v552_v15  ;;  %990 = vmatprep.subr.mxu1 %v569_v21 }
  0x40   : > { %902 = vmatpush3.msra.mxu0 %v536_v16  ;;  %991 = vmatpush3.msra.mxu1 %v569_v21 }
  0x41   : > { %903 = vmatprep.subr.mxu0 %v551_v17  ;;  %992 = vmatprep.subr.mxu1 %v568_v24 }
  0x42   : > { %904 = vmatpush3.msra.mxu0 %v535_v19  ;;  %993 = vmatpush3.msra.mxu1 %v568_v24 }
  0x43   : > { %905 = vmatprep.subr.mxu0 %v550_v20  ;;  %994 = vmatprep.subr.mxu1 %v567_v27 }
  0x44   : > { %906 = vmatpush3.msra.mxu0 %v534_v22  ;;  %995 = vmatpush3.msra.mxu1 %v567_v27 }
  0x45   : > { %907 = vmatprep.subr.mxu0 %v549_v23  ;;  %996 = vmatprep.subr.mxu1 %v566_v30 }
  0x46   : > { %908 = vmatpush3.msra.mxu0 %v533_v25  ;;  %997 = vmatpush3.msra.mxu1 %v566_v30 }
  0x47   : > { %909 = vmatprep.subr.mxu0 %v548_v26  ;;  %998 = vmatprep.subr.mxu1 %v565_v33 }
  0x48   : > { %910 = vmatpush3.msra.mxu0 %v532_v28  ;;  %999 = vmatpush3.msra.mxu1 %v565_v33 }
  0x49   : > { %911 = vmatprep.subr.mxu0 %v547_v29  ;;  %1000 = vmatprep.subr.mxu1 %v564_v36 }
  0x4a   : > { %912 = vmatpush3.msra.mxu0 %v531_v31  ;;  %1001 = vmatpush3.msra.mxu1 %v564_v36 }
  0x4b   : > { %913 = vmatprep.subr.mxu0 %v546_v32  ;;  %1002 = vmatprep.subr.mxu1 %v563_v38 }
  0x4c   : > { %914 = vmatpush3.msra.mxu0 %v530_v34  ;;  %1003 = vmatpush3.msra.mxu1 %v563_v38 }
  0x4d   : > { %915 = vmatprep.subr.mxu0 %v545_v35  ;;  %1004 = vmatprep.subr.mxu1 %v562_v39 }
  0x4e   : > { %916 = vmatpush3.msra.mxu0 %v529_v37  ;;  %1005 = vmatpush3.msra.mxu1 %v562_v39 }
  0x4f   : > { %1006 = vmatprep.subr.mxu1 %v561_v40 }
  0x50   : > { %1007 = vmatpush3.msra.mxu1 %v561_v40 }
  0xed   : > { %v861_v43 = vpop.f32.mrf.mxu0 }
  0xef   : > { %v975_v44 = vpop.f32.mrf.mxu1  ;;  %v862_v45 = vpop.f32.mrf.mxu0 }
  0xf0   : > { %v863_v46 = vadd.f32 %v862_v45, %v861_v43 }
  0xf1   : > { %v486_v47 = vpop.f32.mrf.mxu1  ;;  %v864_v49 = vpop.f32.mrf.mxu0 }
  0xf2   : > { %v487_v50 = vadd.f32 %v863_v46, %v486_v47 }
  0xf3   : > { %v865_v51 = vpop.f32.mrf.mxu0 }
  0xf4   : > { %v502_v54 = vmul.f32 %v818_v48, %v487_v50  ;;  %v866_v55 = vadd.f32 %v865_v51, %v864_v49 }
  0xf6   : > { %v492_v56 = vadd.f32 %v975_v44, %v866_v55  ;;  %v511_v57 = vadd.f32 %v819_v52, %v502_v54 }
  0xf8   : > { %v503_v58 = vmul.f32 %v818_v48, %v492_v56  ;;  %v513_v59 = vmax.f32 %v511_v57, 0.0 }
  0xfa   : > { %v517_v60 = vrot.slane %v513_v59, 7  ;;  %641 = vmatprep.mubr.f32.mxu0 %v513_v59  ;;  %v512_v61 = vadd.f32 %v819_v52, %v503_v58  ;;  %v523_v0 = vrot.slane %v513_v59, 1 }
  0xfc   : > { %821 = vmatmul.mubr.msk.f32.vlgmr.msra.gmra.mxu0 %vm1245_vm2, %v517_v60  ;;  %v514_v62 = vmax.f32 %v512_v61, 0.0 }
  0xfe   : > { %646 = vmatprep.mubr.f32.mxu0 %v514_v62  ;;  %v518_v63 = vrot.slane %v514_v62, 7  ;;  %v524_v1 = vrot.slane %v514_v62, 1 }
 0x100   : > { %v519_v2 = vsel %vm283_vm0, %v517_v60, %v518_v63  ;;  %v525_v3 = vsel %vm290_vm1, %v523_v0, %v524_v1 }
 0x101   : > { %647 = vmatmul.mubr.f32.gmra.mxu0 %v519_v2  ;;  %1008 = vmatprep.mubr.f32.mxu1 %v525_v3 }
 0x102   : > { %1009 = vmatmul.mubr.msk.f32.vlgmr.msra.gmra.mxu1 %vm290_vm1, %v524_v1 }
 0x1bc   : > { %v917_v4 = vpop.f32.mrf.mxu0 }
 0x1be   : > { %v918_v5 = vpop.f32.mrf.mxu0 }
 0x1bf   : > { %v919_v53 = vadd.f32 %v918_v5, %v917_v4 }
 0x1c1   : > { %v920_v6 = vpop.f32.mrf.mxu0 }
 0x1c2   : > { %v1010_v7 = vpop.f32.mrf.mxu1 }
 0x1c3   : > { %v921_v8 = vpop.f32.mrf.mxu0 }
 0x1c4   : > { %v922_v9 = vadd.f32 %v921_v8, %v920_v6  ;;  %v718_v10 = vpop.f32.mrf.mxu1 }
 0x1c5   : > { %v719_v12 = vadd.f32 %v919_v53, %v718_v10 }
 0x1c6   : > { %v724_v13 = vadd.f32 %v1010_v7, %v922_v9 }
 0x1c7   : > { %v734_v15 = vmul.f32 %v823_v11, %v719_v12 }
 0x1c8   : > { %v735_v16 = vmul.f32 %v823_v11, %v724_v13 }
 0x1c9   : > { %v743_v17 = vadd.f32 %v824_v14, %v734_v15 }
 0x1ca   : > { %v744_v18 = vadd.f32 %v824_v14, %v735_v16 }
 0x1cb   : > { %v745_v19 = vadd.f32 %v743_v17, %v1216_v41 }
 0x1cc   : > { %v746_v20 = vadd.f32 %v744_v18, %v1218_v42 }
 0x1cd   : > { %v747_v21 = vmax.f32 %v745_v19, 0.0 }
 0x1ce   : > { %v748_v22 = vmax.f32 %v746_v20, 0.0 }
 0x1cf   : > { %749 = vst [vmem:[%s278_s30] sm:$0xff] %v747_v21 }
 0x1d0   : > { %750 = vst [vmem:[%s278_s30 + $0x8] sm:$0xff] %v748_v22 }
 0x1d1 PF: > { %s17_s24 = sadd.s32 1, %s1025_s24  }
 0x1d2   : > { %p14_p4 = scmp.ge.s32.totalorder %s17_s24, 4  }
 0x1d4   :  { %16 = sbr.rel (!%p14_p4) target bundleno = 1 (0x1), region = 78 }

</bundles_post_ra>
